<compile_context>
chip_gen: v7x
topology: tpu7x:2x2x1
jax: 0.10.0
libtpu: 0.0.40
codegen_flags: <defaults>
</compile_context>

<pallas_src>
import functools

import jax
import jax.numpy as jnp
import numpy as np
from jax import lax
from jax.experimental import pallas as pl
from jax.experimental.pallas import tpu as pltpu

EPS = 1e-5


def _round_up(x, m):
    return (x + m - 1) // m * m


@functools.cache
def _roll_matches_jnp():
    """One-time on-device probe of pltpu.roll's shift convention (robust across versions)."""
    def k(x_ref, o_ref):
        o_ref[...] = pltpu.roll(x_ref[...], shift=1, axis=1)

    x = jnp.broadcast_to(jnp.arange(128, dtype=jnp.float32), (8, 128))
    y = pl.pallas_call(k, out_shape=jax.ShapeDtypeStruct((8, 128), jnp.float32))(x)
    # jnp.roll convention: y[:, 1] == x[:, 0] == 0
    return bool(np.asarray(y)[0, 1] == 0.0)


# ----------------------------- Pallas kernel --------------------------------
def _resblock_kernel(*refs, tap_shifts, identity):
    """One group of G images per grid step.

    Activations: (C_pad, GN) -- C_pad channels on sublanes (multiple of 16), GN = G * N
    zero-padded row-major pixels on lanes (each image owns an N-aligned span, N % 128 == 0).
    """
    if identity:
        (x_ref, w1_ref, b1_ref, w2_ref, b2_ref, mask_ref, out_ref) = refs
    else:
        (x_ref, w1_ref, b1_ref, w2_ref, b2_ref, ws_ref, bs_ref, mask_ref,
         out_ref) = refs

    x_bf = x_ref[0]                                # (Cin_pad, GN) bf16
    mask = mask_ref[...]                           # (1, GN) f32: 1 interior, 0 halo/tail

    def im2col(v_bf):
        # bf16 (C, GN) on the zero-padded flat grid -> bf16 (9*C, GN) patch matrix.
        # Taps are static lane rolls (XLU slot, not VALU).  Wrap-around / cross-image bleed
        # only touches halo & tail lanes, which are zero / masked / cropped.
        return jnp.concatenate(
            [v_bf if s == 0 else pltpu.roll(v_bf, shift=s, axis=1) for s in tap_shifts],
            axis=0)

    # conv1 (3x3) + BN1 (scale folded into w1) + ReLU  -- one merged-K MXU matmul
    y1 = jnp.dot(w1_ref[...], im2col(x_bf), preferred_element_type=jnp.float32)
    h1 = jnp.maximum(y1 + b1_ref[...], 0.0) * mask   # zero halo ring => conv2's zero padding
    h1_bf = h1.astype(jnp.bfloat16)                  # single narrowing cast before im2col

    # conv2 (3x3) + BN2 (scale folded into w2)
    y2 = jnp.dot(w2_ref[...], im2col(h1_bf), preferred_element_type=jnp.float32)
    y2 = y2 + b2_ref[...]

    # shortcut
    if identity:
        ys = x_bf.astype(jnp.float32)
    else:
        ys = jnp.dot(ws_ref[...], x_bf, preferred_element_type=jnp.float32) + bs_ref[...]

    out_ref[0] = jnp.maximum(y2 + ys, 0.0).astype(out_ref.dtype)


# ----------------------------- wrapper ---------------------------------------
def residual_block_2d(x_nchw, params):
    """x_nchw: (B, Cin, H, W) float32.  Returns (B, Cout, H, W) float32."""
    B, cin, H, W = x_nchw.shape
    cout = params["cout"]
    identity = params["ws"] is None
    Hp, Wp = H + 2, W + 2
    n_valid = Hp * Wp
    n = _round_up(n_valid, 128)            # per-image lane span (lane-dense, roll-friendly)
    cinp = _round_up(cin, 16)              # bf16 sublane pack
    coutp = _round_up(cout, 16)

    # ---- images per grid step: amortize per-step overhead, stay inside a VMEM budget ----
    # rough per-image live set: bf16 im2col temps + f32 partials + pipelined in/out blocks
    per_image_bytes = n * (22 * cinp + 40 * coutp)
    vmem_budget = 24 << 20                 # leave room for weights + double buffers
    G = int(max(1, min(B, vmem_budget // max(per_image_bytes, 1), 64)))
    Bp = _round_up(B, G)
    num_groups = Bp // G
    GN = G * n

    # ---- pack input: pad channels + 1px halo, flatten HxW, group G images along lanes ---
    xp = jnp.pad(x_nchw.astype(jnp.float32),
                 ((0, Bp - B), (0, cinp - cin), (1, 1), (1, 1)))
    xp = xp.reshape(Bp, cinp, n_valid)
    xp = jnp.pad(xp, ((0, 0), (0, 0), (0, n - n_valid))).astype(jnp.bfloat16)
    xg = (xp.reshape(num_groups, G, cinp, n)
            .transpose(0, 2, 1, 3)
            .reshape(num_groups, cinp, GN))

    # interior mask (1 = real output pixel, 0 = halo / lane tail), tiled over the G images
    rr = np.arange(Hp)[:, None]
    cc = np.arange(Wp)[None, :]
    inner = ((rr >= 1) & (rr <= H) & (cc >= 1) & (cc <= W)).astype(np.float32)
    mask_np = np.zeros((1, n), np.float32)
    mask_np[0, :n_valid] = inner.reshape(-1)
    mask = jnp.asarray(np.tile(mask_np, (1, G)))

    # flat-index offsets of the 3x3 taps on the padded grid -> static lane-roll shifts
    offs = [(kh - 1) * Wp + (kw - 1) for kh in range(3) for kw in range(3)]
    sgn = -1 if _roll_matches_jnp() else 1
    tap_shifts = tuple((sgn * d) % GN for d in offs)

    def inv(shape):                        # grid-invariant inputs (weights / biases / mask)
        return pl.BlockSpec(shape, lambda b: (0,) * len(shape))

    in_specs = [pl.BlockSpec((1, cinp, GN), lambda b: (b, 0, 0)),
                inv((coutp, 9 * cinp)), inv((coutp, 1)),
                inv((coutp, 9 * coutp)), inv((coutp, 1))]
    operands = [xg, params["w1"], params["b1"], params["w2"], params["b2"]]
    weight_bytes = ((params["w1"].size + params["w2"].size) * 2
                    + (params["b1"].size + params["b2"].size) * 4)
    if not identity:
        in_specs += [inv((coutp, cinp)), inv((coutp, 1))]
        operands += [params["ws"], params["bs"]]
        weight_bytes += params["ws"].size * 2 + params["bs"].size * 4
    in_specs += [inv((1, GN))]
    operands += [mask]

    # advisory cost estimate (helps XLA schedule the surrounding pad/crop ops)
    total_px = num_groups * GN
    flops = 2 * coutp * (9 * cinp + 9 * coutp + (0 if identity else cinp)) * total_px
    bytes_accessed = int(xg.size * 2 + num_groups * coutp * GN * 4
                         + weight_bytes + mask.size * 4)

    out_flat = pl.pallas_call(
        functools.partial(_resblock_kernel, tap_shifts=tap_shifts, identity=identity),
        out_shape=jax.ShapeDtypeStruct((num_groups, coutp, GN), jnp.float32),
        grid_spec=pltpu.PrefetchScalarGridSpec(
            num_scalar_prefetch=0,
            grid=(num_groups,),
            in_specs=in_specs,
            out_specs=pl.BlockSpec((1, coutp, GN), lambda b: (b, 0, 0)),
        ),
        compiler_params=pltpu.CompilerParams(
            dimension_semantics=("parallel",),
            vmem_limit_bytes=48 * 1024 * 1024),  # > v5e's 16 MiB default, < v7x physical
        cost_estimate=pl.CostEstimate(flops=int(flops), transcendentals=0,
                                      bytes_accessed=bytes_accessed),
    )(*operands)

    # ungroup, drop channel / lane padding, crop the halo; result is already NCHW
    out = (out_flat.reshape(num_groups, coutp, G, n)
                   .transpose(0, 2, 1, 3)
                   .reshape(Bp, coutp, n))
    out = out[:B, :cout, :n_valid].reshape(B, cout, Hp, Wp)
    return out[:, :, 1:H + 1, 1:W + 1]


# ----------------------------- parameters ------------------------------------
def _fold_bn(conv_bias, gamma, beta, mean, var):
    scale = gamma / jnp.sqrt(var + EPS)
    bias = beta + (conv_bias - mean) * scale
    return scale, bias


def _pack_conv3x3(w_hwio, scale, cin, cout, cinp, coutp):
    # (3,3,cin,cout) HWIO * BN scale -> (coutp, 9*cinp) MXU weight (zero-padded channels).
    w = w_hwio * scale                                   # BN scale folded into the weights
    w = jnp.pad(w, ((0, 0), (0, 0), (0, cinp - cin), (0, coutp - cout)))
    w = jnp.transpose(w, (3, 0, 1, 2)).reshape(coutp, 9 * cinp)
    return w.astype(jnp.bfloat16)


def _pack_bias(bias, cout, coutp):
    return jnp.pad(bias, (0, coutp - cout)).reshape(coutp, 1).astype(jnp.float32)


def make_params(key, cin, cout):
    ks = jax.random.split(key, 18)
    nrm = lambda k, s, sc=0.2: sc * jax.random.normal(k, s, jnp.float32)

    raw = {
        "w1": nrm(ks[0], (3, 3, cin, cout)), "cb1": nrm(ks[1], (cout,)),
        "g1": 1.0 + nrm(ks[2], (cout,)), "be1": nrm(ks[3], (cout,)),
        "mu1": nrm(ks[4], (cout,)), "v1": 0.5 + jnp.abs(nrm(ks[5], (cout,))),
        "w2": nrm(ks[6], (3, 3, cout, cout)), "cb2": nrm(ks[7], (cout,)),
        "g2": 1.0 + nrm(ks[8], (cout,)), "be2": nrm(ks[9], (cout,)),
        "mu2": nrm(ks[10], (cout,)), "v2": 0.5 + jnp.abs(nrm(ks[11], (cout,))),
    }
    if cin == cout:
        raw["shortcut"] = None
    else:
        raw["shortcut"] = (
            nrm(ks[12], (cin, cout)), nrm(ks[13], (cout,)),
            1.0 + nrm(ks[14], (cout,)), nrm(ks[15], (cout,)),
            nrm(ks[16], (cout,)), 0.5 + jnp.abs(nrm(ks[17], (cout,))),
        )

    cinp, coutp = _round_up(cin, 16), _round_up(cout, 16)
    s1, b1 = _fold_bn(raw["cb1"], raw["g1"], raw["be1"], raw["mu1"], raw["v1"])
    s2, b2 = _fold_bn(raw["cb2"], raw["g2"], raw["be2"], raw["mu2"], raw["v2"])

    folded = {
        "cout": cout,
        "w1": _pack_conv3x3(raw["w1"], s1, cin, cout, cinp, coutp),
        "b1": _pack_bias(b1, cout, coutp),
        "w2": _pack_conv3x3(raw["w2"], s2, cout, cout, coutp, coutp),
        "b2": _pack_bias(b2, cout, coutp),
    }
    if raw["shortcut"] is None:
        folded["ws"] = None
        folded["bs"] = None
    else:
        wsr, cbs, gs, bes, mus, vs = raw["shortcut"]
        ss, bs = _fold_bn(cbs, gs, bes, mus, vs)
        wsp = jnp.pad(wsr * ss, ((0, cinp - cin), (0, coutp - cout)))
        folded["ws"] = jnp.transpose(wsp, (1, 0)).astype(jnp.bfloat16)   # (coutp, cinp)
        folded["bs"] = _pack_bias(bs, cout, coutp)
    return folded, raw


# ----------------------------- pure-JAX reference -----------------------------
def ref_forward(x_nchw, raw):
    x = jnp.transpose(x_nchw, (0, 2, 3, 1)).astype(jnp.float32)

    def conv(a, w):
        return lax.conv_general_dilated(a, w, (1, 1), "SAME",
                                        dimension_numbers=("NHWC", "HWIO", "NHWC"))

    def bn(y, g, be, mu, v):
        return (y - mu) / jnp.sqrt(v + EPS) * g + be

    y = jax.nn.relu(bn(conv(x, raw["w1"]) + raw["cb1"],
                       raw["g1"], raw["be1"], raw["mu1"], raw["v1"]))
    y = bn(conv(y, raw["w2"]) + raw["cb2"],
           raw["g2"], raw["be2"], raw["mu2"], raw["v2"])
    if raw["shortcut"] is None:
        sc = x
    else:
        ws, cbs, gs, bes, mus, vs = raw["shortcut"]
        sc = bn(conv(x, ws[None, None]) + cbs, gs, bes, mus, vs)
    return jnp.transpose(jax.nn.relu(y + sc), (0, 3, 1, 2))


# ----------------------------- main -------------------------------------------
if __name__ == "__main__":
    key = jax.random.PRNGKey(0)
    B, H, W = 2, 16, 16
    for cin, cout in [(4, 8), (8, 8)]:      # projection shortcut and identity shortcut
        key, kx, kp = jax.random.split(key, 3)
        x = jax.random.normal(kx, (B, cin, H, W), jnp.float32)
        params, raw = make_params(kp, cin, cout)

        out = jax.block_until_ready(residual_block_2d(x, params))
        ref = jax.block_until_ready(ref_forward(x, raw))

        assert out.shape == (B, cout, H, W)
        # conv math runs in bf16 with f32 accumulation -> inference-grade 5e-2 tolerance
        if not np.allclose(np.asarray(out), np.asarray(ref), rtol=5e-2, atol=5e-2):
            err = float(np.max(np.abs(np.asarray(out) - np.asarray(ref))))
            raise AssertionError(
                f"Pallas kernel mismatch (cin={cin}, cout={cout}): max abs err {err}")
    print("KERNEL_OK")
</pallas_src>

<mosaic_0001>
module attributes {stable_mosaic.version = 11 : i64} {
  func.func @k(%arg0: memref<8x128xf32, #tpu.memory_space<vmem>>, %arg1: memref<8x128xf32, #tpu.memory_space<vmem>>) attributes {dimension_semantics = [], scalar_prefetch = 0 : i64, scratch_operands = 0 : i64, tpu.core_type = #tpu.core_type<tc>} {
    %c0 = arith.constant 0 : index
    %c0_0 = arith.constant 0 : index
    %0 = vector.load %arg0[%c0, %c0_0] : memref<8x128xf32, #tpu.memory_space<vmem>>, vector<8x128xf32>
    %c1_i32 = arith.constant 1 : i32
    %1 = tpu.dynamic_rotate %0 by %c1_i32 dim 1 : vector<8x128xf32>, i32 -> vector<8x128xf32>
    %c0_1 = arith.constant 0 : index
    %c0_2 = arith.constant 0 : index
    %2 = vector.load %arg1[%c0_1, %c0_2] : memref<8x128xf32, #tpu.memory_space<vmem>>, vector<8x128xf32>
    tpu.vector_store %arg1[%c0_1, %c0_2], %1 {strides = array<i32>} : memref<8x128xf32, #tpu.memory_space<vmem>>, vector<8x128xf32>,
    return
  }
}

</mosaic_0001>

<bundles_post_ra>
// kernel: tpu_custom_call.1
= control target key start
LH: loop header
LB: loop body
LE: loop exit
PB: predicated region body
PF: predicated region fallthrough
CT: control target
= control target key end

     0   :  { %6 = vsyncpa [#allocation3], 0  ;;  %s128_s0 = inlined_call_operand.hbm [shape: f32[8,128], index: 0, kind: input, shape index: {}]   ;;  %s129_s1 = inlined_call_operand.hbm [shape: f32[8,128], index: 1, kind: output, shape index: {}]  }
   0x1   :  { %7 = vsyncpa [#allocation4], 0  ;;  %s91_s6 = smov [#allocation2]   ;;  %s43_s10 = scalar_lea.hbm %s128_s0, 128 }
   0x2   :  { %s14_s7 = sshll.u32 %s91_s6, 4  ;;  %p44_p0 = scmp.ne.s32.totalorder %s128_s0, %s43_s10  ;;  %s15_s7 = int_to_ptr.vmem [resolvable:$true] %s14_s7 }
   0x3   :  { %p47_p1 = scmp.lt.u32.totalorder %s43_s10, %s128_s0 }
   0x5   :  { %p49_p2 = pnand %p47_p1, %p44_p0 }
   0x7   :  { %52 = shalt.err (!%p49_p2)
}
   0x8   :  { %s53_s15 = scalar_lea.vmem %s15_s7, 128  ;;  %p58_p4 = scmp.lt.s32.totalorder %s15_s7, %s15_s7 }
   0x9   :  { %p54_p3 = scmp.ne.s32.totalorder %s15_s7, %s53_s15  ;;  %p59_p5 = scmp.lt.s32.totalorder %s53_s15, %s53_s15 }
   0xb   :  { %p60_p6 = por %p59_p5, %p58_p4 }
   0xd   :  { %p61_p7 = pnand %p60_p6, %p54_p3 }
   0xf   :  { %64 = shalt.err (!%p61_p7)
}
  0x10   :  { %17 = dma.hbm_to_vmem [thread:$0]  %s128_s0, 128, %s15_s7, [#allocation3]  }
  0x11   :  { %87 = dma.done.wait [#allocation3], 128  }
  0x12   :  { %88 = vsyncadd [#allocation3], 4294967168  ;;  %v21_v0 = vld [vmem:[#allocation2] sm:$0xff]  ;;  %s92_s18 = smov 1   ;;  %s93_s19 = smov [#allocation5]  }
  0x13   :  { %22 = vrot.lane.b32.xlu0 %v21_v0, %s92_s18  ;;  %s31_s20 = sshll.u32 %s93_s19, 4  ;;  %s32_s20 = int_to_ptr.vmem [resolvable:$true] %s31_s20 }
  0x14   :  { %s65_s21 = scalar_lea.vmem %s32_s20, 128  ;;  %p70_p9 = scmp.lt.s32.totalorder %s32_s20, %s32_s20 }
  0x15   :  { %p66_p8 = scmp.ne.s32.totalorder %s32_s20, %s65_s21  ;;  %p71_p10 = scmp.lt.s32.totalorder %s65_s21, %s65_s21 }
  0x17   :  { %p72_p11 = por %p71_p10, %p70_p9 }
  0x19   :  { %p73_p12 = pnand %p72_p11, %p66_p8 }
  0x85   :  { %v23_v1 = vpop.permute.xlu0 %22 }
  0x86   :  { %24 = vst [vmem:[#allocation5] sm:$0xff] %v23_v1 }
  0x87   :  { %76 = shalt.err (!%p73_p12)
}
  0x88   :  { %s77_s0 = scalar_lea.hbm %s129_s1, 128 }
  0x89   :  { %p78_p13 = scmp.ne.s32.totalorder %s129_s1, %s77_s0  ;;  %p81_p0 = scmp.lt.u32.totalorder %s77_s0, %s129_s1 }
  0x8b   :  { %p83_p1 = pnand %p81_p0, %p78_p13 }
  0x8d   :  { %86 = shalt.err (!%p83_p1)
}
  0x8e   :  { %34 = dma.vmem_to_hbm [thread:$0]  %s32_s20, 128, %s129_s1, [#allocation4]  }
  0x8f   :  { %89 = dma.done.wait [#allocation4], 128  }
  0x90   :  { %90 = vsyncadd [#allocation4], 4294967168 }
  0x91   :  { %38 = vsyncpa [#allocation3], 1 }
  0x92   :  { %39 = vsyncpa [#allocation4], 1 }

</bundles_post_ra>
